<compile_context>
chip_gen: v5e
topology: v5e:2x2
jax: 0.10.0
libtpu: 0.0.40
codegen_flags: <defaults>
</compile_context>

<pallas_src>
import numpy as np

import jax
import jax.numpy as jnp
from jax import lax
from jax.experimental import pallas as pl
from jax.experimental.pallas import tpu as pltpu

# ----- module constants (mirroring STQNet.py globals) --------------------------------
IMG_SIZE = 32            # img_size == self.dim
NUM_HEADS = 4
WINDOW = 8
QKV_BIAS = True
DIM = IMG_SIZE           # 32
HEAD_DIM = DIM // NUM_HEADS
SCALE = HEAD_DIM ** (-0.5)
DW = DIM // WINDOW       # 4  (kv feature width / LayerNorm width)
C_IN = 2                 # Conv2d(2, 2, ...) forces C == 2
OH = IMG_SIZE // WINDOW  # 4  conv output spatial size

N_IN = C_IN * IMG_SIZE * IMG_SIZE   # 2048 : one flattened (2,32,32) element per row
N_CONV = C_IN * OH * OH             # 32   : flattened conv output (oc, oh, ow)
N_OUT = C_IN * IMG_SIZE * IMG_SIZE  # 2048 : flattened (2,32,32) output per row


# ======================================================================================
# Fused forward kernel: one grid step processes BB batch elements, stacked on sublanes
# ======================================================================================
def _fused_kernel(x_ref, wslab_ref, mslab_ref, o_ref):
    f32 = jnp.float32
    xb = x_ref[...]                                   # (BB, 2048) lane-dense rows

    # static, tile-aligned views into the two resident constant slabs (free)
    wconv = wslab_ref[0:N_IN, :]                      # (2048, 32) conv-as-matmul weight
    gavg = wslab_ref[N_IN:N_IN + N_CONV, :]           # (32, 32)   LayerNorm group-mean
    mmat = mslab_ref[0:N_CONV, :]                     # (32, 2048) kv o gather o proj o (g,b)
    bias = mslab_ref[N_CONV:N_CONV + 1, :]            # (1, 2048)  folded output bias

    # ---- self.sr: Conv2d(2,2,k=8,s=8) as a dense matmul ------------------------------
    # (conv bias omitted: it is constant inside every LayerNorm group, hence exactly
    #  removed by the mean subtraction below.)
    conv = jnp.dot(xb, wconv, preferred_element_type=f32)            # (BB, 32)

    # ---- self.norm: LayerNorm(4) over each group of 4 lanes (biased var, eps=1e-5) ----
    mu = jnp.dot(conv, gavg, preferred_element_type=f32)             # group means, bcast
    d = conv - mu
    var = jnp.dot(d * d, gavg, preferred_element_type=f32)
    z = d * lax.rsqrt(var + 1e-5)                                    # (BB, 32)

    # ---- kv linear + S==1 attention gather + proj (+ gamma/beta), all folded in mmat --
    o_ref[...] = jnp.dot(z, mmat, preferred_element_type=f32) + bias  # (BB, 2048)


# ======================================================================================
# Host-side constant folding
# ======================================================================================
def derive_fused_inputs(p):
    """Fold conv / layernorm-mean / kv / S==1-gather / proj / gamma,beta into 2 slabs."""
    wsr = np.asarray(p["wsr"], np.float32)            # (2,2,8,8)  OIHW
    wkv = np.asarray(p["wkv"], np.float32)            # (8,4)      (out, in)
    bkv = np.asarray(p["bkv"], np.float32)            # (8,)
    wproj_t = np.asarray(p["wproj_t"], np.float32)    # (32,32)    (in, out)
    bproj = np.asarray(p["bproj"], np.float32)        # (32,)
    gamma = np.asarray(p["gamma"], np.float32)        # (4,)
    beta = np.asarray(p["beta"], np.float32)          # (4,)

    # --- Conv2d as a dense (2048 -> 32) matmul -----------------------------------------
    # input lane  = ic*1024 + h*32 + w ;  output lane = oc*16 + (h//8)*4 + (w//8)
    wconv = np.zeros((N_IN, N_CONV), np.float32)
    for ic in range(C_IN):
        for h in range(IMG_SIZE):
            for w in range(IMG_SIZE):
                lane = ic * IMG_SIZE * IMG_SIZE + h * IMG_SIZE + w
                col = (h // WINDOW) * OH + (w // WINDOW)
                for oc in range(C_IN):
                    wconv[lane, oc * OH * OH + col] = wsr[oc, ic, h % WINDOW, w % WINDOW]

    # --- LayerNorm(4) group-mean matrix (groups = consecutive 4 lanes) ------------------
    gavg = np.zeros((N_CONV, N_CONV), np.float32)
    for j in range(N_CONV):
        g0 = (j // DW) * DW
        gavg[g0:g0 + DW, j] = 1.0 / DW

    # --- kv linear + single-key attention gather, as a (32 -> 2048) affine map ----------
    # pre[rho, w] = kvmat[c*4 + 2 + u//2, (u%2)*4 + w%4],  u = rho//16, c = (rho//8)%2,
    # where rho = c'*H + h indexes rows of the pre-proj (64,32) image and kvmat is the
    # (8,8) kv output with row = oc*4 + oh.  (Encodes reshape/permute/t(1,2)/reshape.)
    m_pre = np.zeros((N_CONV, N_OUT), np.float32)
    b_pre = np.zeros((N_OUT,), np.float32)
    for rho in range(C_IN * IMG_SIZE):
        u, c = rho // 16, (rho // 8) % 2
        src_row = c * DW + 2 + u // 2
        for w in range(IMG_SIZE):
            src_col = (u % 2) * DW + (w % DW)
            col = rho * IMG_SIZE + w
            b_pre[col] = bkv[src_col]
            m_pre[src_row * DW:(src_row + 1) * DW, col] = wkv[src_col, :]

    # --- fold in self.proj: out[rho, w'] = sum_w pre[rho, w] * wproj_t[w, w'] + bproj ---
    m_out = np.einsum("jrw,wk->jrk",
                      m_pre.reshape(N_CONV, C_IN * IMG_SIZE, IMG_SIZE),
                      wproj_t).reshape(N_CONV, N_OUT)
    b_out = (b_pre.reshape(C_IN * IMG_SIZE, IMG_SIZE) @ wproj_t
             + bproj[None, :]).reshape(N_OUT)

    # --- fold in LayerNorm gamma/beta: xn = z * gamma_rep + beta_rep --------------------
    gamma_rep = np.tile(gamma, N_CONV // DW)          # gamma_rep[j] = gamma[j % 4]
    beta_rep = np.tile(beta, N_CONV // DW)
    m_final = gamma_rep[:, None] * m_out
    b_final = beta_rep @ m_out + b_out

    slab_w = np.concatenate([wconv, gavg], axis=0)                 # (2080, 32)
    slab_m = np.concatenate([m_final, b_final[None, :]], axis=0)   # (33, 2048)
    return dict(wslab=jnp.asarray(slab_w), mslab=jnp.asarray(slab_m))


# ======================================================================================
# Wrapper
# ======================================================================================
def _pick_block(batch):
    """Padded batch and per-step block: sublane-aligned (multiple of 8), <=64 rows,
    and >=2 grid steps when the batch allows so both v7x TensorCores get work."""
    bp = ((batch + 7) // 8) * 8
    n8 = bp // 8
    groups = max(1, min(8, n8 // 2)) if n8 >= 2 else 1
    bb = 8 * groups
    bp = ((bp + bb - 1) // bb) * bb
    return bp, bb


@jax.jit
def global_attention_forward(x, fp):
    B, C, H, W = x.shape
    if (C, H, W) != (C_IN, IMG_SIZE, IMG_SIZE):
        # TODO(synk): fused kernel is specialized to the module's canonical shapes
        # (C=2, H=W=img_size=32 => kv seq len S==1); the general S>1 softmax/attention
        # path is not implemented here.
        raise NotImplementedError("fused GlobalAttention kernel requires (B, 2, 32, 32) input")

    x2d = x.reshape(B, N_IN).astype(jnp.float32)       # lane-dense; same bytes as (2,32,32)
    bp, bb = _pick_block(B)
    if bp != B:                                        # zero-pad batch to a block multiple
        x2d = jnp.concatenate([x2d, jnp.zeros((bp - B, N_IN), jnp.float32)], axis=0)

    wslab, mslab = fp["wslab"], fp["mslab"]
    flops = bp * 2 * (N_IN * N_CONV + 2 * N_CONV * N_CONV + N_CONV * N_OUT)
    bytes_accessed = bp * (N_IN + N_OUT) * 4 + (wslab.size + mslab.size) * 4

    out = pl.pallas_call(
        _fused_kernel,
        out_shape=jax.ShapeDtypeStruct((bp, N_OUT), jnp.float32),
        grid=(bp // bb,),
        in_specs=[
            pl.BlockSpec((bb, N_IN), lambda b: (b, 0)),
            pl.BlockSpec(wslab.shape, lambda b: (0, 0)),   # resident constant slab
            pl.BlockSpec(mslab.shape, lambda b: (0, 0)),   # resident constant slab
        ],
        out_specs=pl.BlockSpec((bb, N_OUT), lambda b: (b, 0)),
        compiler_params=pltpu.CompilerParams(dimension_semantics=("parallel",)),
        cost_estimate=pl.CostEstimate(flops=flops, transcendentals=bp * N_CONV,
                                      bytes_accessed=bytes_accessed),
    )(x2d, wslab, mslab)
    return out[:B].reshape(B, C, H, W)


# ======================================================================================
# Pure-JAX reference (mirrors the PyTorch module op-for-op; correctness check only)
# ======================================================================================
def reference_forward(x, p):
    B, C, H, W = x.shape
    q = x @ p["wq_t"] + p["bq"]
    q = q.reshape(B, C, -1, DW, DW).transpose(0, 1, 3, 2, 4)
    x_ = lax.conv_general_dilated(
        x, p["wsr"], (WINDOW, WINDOW), "VALID",
        dimension_numbers=("NCHW", "OIHW", "NCHW"),
    ) + p["bsr"].reshape(1, 2, 1, 1)
    x_ = x_.reshape(B, C, -1, DW, DW)
    mu = x_.mean(-1, keepdims=True)
    var = ((x_ - mu) ** 2).mean(-1, keepdims=True)
    x_ = (x_ - mu) / jnp.sqrt(var + 1e-5) * p["gamma"] + p["beta"]
    kv = x_ @ p["wkv_t"] + p["bkv"]
    kv = kv.reshape(B, C, -1, 2, DW, DW).transpose(3, 0, 1, 4, 2, 5)
    k, v = (kv[0], kv[1])
    attn = jnp.einsum("bchld,bchsd->bchls", q, k) * SCALE
    attn = jax.nn.softmax(attn, axis=-1)
    out = jnp.einsum("bchls,bchsd->bchld", attn, v)
    out = jnp.swapaxes(out, 1, 2).reshape(B, C, H, W)
    return out @ p["wproj_t"] + p["bproj"]


# ======================================================================================
def make_params(key):
    ks = jax.random.split(key, 10)
    wq = jax.random.normal(ks[0], (DIM, DIM), jnp.float32) * 0.05        # (out, in)
    bq = jax.random.normal(ks[1], (DIM,), jnp.float32) * 0.05
    wkv = jax.random.normal(ks[2], (2 * DW, DW), jnp.float32) * 0.05
    bkv = jax.random.normal(ks[3], (2 * DW,), jnp.float32) * 0.05
    wproj = jax.random.normal(ks[4], (DIM, DIM), jnp.float32) * 0.05
    bproj = jax.random.normal(ks[5], (DIM,), jnp.float32) * 0.05
    wsr = jax.random.normal(ks[6], (2, 2, WINDOW, WINDOW), jnp.float32) * 0.05  # OIHW
    bsr = jax.random.normal(ks[7], (2,), jnp.float32) * 0.05
    gamma = 1.0 + 0.1 * jax.random.normal(ks[8], (DW,), jnp.float32)
    beta = 0.1 * jax.random.normal(ks[9], (DW,), jnp.float32)
    if not QKV_BIAS:
        bq = jnp.zeros_like(bq)
        bkv = jnp.zeros_like(bkv)
    return dict(
        wq_t=wq.T, bq=bq,                 # q projection (no effect on output when S == 1)
        wkv=wkv, wkv_t=wkv.T, bkv=bkv,
        wproj=wproj, wproj_t=wproj.T, bproj=bproj,
        wsr=wsr, bsr=bsr,
        gamma=gamma, beta=beta,
    )


if __name__ == "__main__":
    # module constraints: C=2, H=W=img_size=32; B=16 gives a 2-step grid (BB=8 per step)
    B, C, H, W = 16, C_IN, IMG_SIZE, IMG_SIZE
    key = jax.random.PRNGKey(0)
    kp, kx = jax.random.split(key)
    params = make_params(kp)
    fused = derive_fused_inputs(params)
    x = jax.random.normal(kx, (B, C, H, W), jnp.float32)

    y = jax.block_until_ready(global_attention_forward(x, fused))
    with jax.default_matmul_precision("float32"):
        y_ref = jax.block_until_ready(reference_forward(x, params))

    assert y.shape == (B, C, H, W)
    assert jnp.allclose(y, y_ref, atol=2e-3, rtol=2e-3), "mismatch vs pure-JAX reference"
    print("KERNEL_OK")
</pallas_src>

<mosaic_0001>
module attributes {stable_mosaic.version = 11 : i64} {
  func.func @_fused_kernel(%arg0: i32, %arg1: memref<8x2048xf32, #tpu.memory_space<vmem>>, %arg2: memref<2080x32xf32, #tpu.memory_space<vmem>>, %arg3: memref<33x2048xf32, #tpu.memory_space<vmem>>, %arg4: memref<8x2048xf32, #tpu.memory_space<vmem>>) attributes {dimension_semantics = [#tpu.dimension_semantics<parallel>], iteration_bounds = array<i64: 2>, scalar_prefetch = 0 : i64, scratch_operands = 0 : i64, tpu.core_type = #tpu.core_type<tc>, window_params = [{transform_indices = @transform_0, window_bounds = array<i64: 8, 2048>}, {pipeline_mode = #tpu.pipeline_mode<synchronous>, transform_indices = @transform_1, window_bounds = array<i64: 2080, 32>}, {pipeline_mode = #tpu.pipeline_mode<synchronous>, transform_indices = @transform_2, window_bounds = array<i64: 33, 2048>}, {transform_indices = @transform_3, window_bounds = array<i64: 8, 2048>}]} {
    %c0 = arith.constant 0 : index
    %c0_0 = arith.constant 0 : index
    %0 = vector.load %arg1[%c0, %c0_0] : memref<8x2048xf32, #tpu.memory_space<vmem>>, vector<8x2048xf32>
    %c0_1 = arith.constant 0 : index
    %c0_2 = arith.constant 0 : index
    %1 = vector.load %arg2[%c0_1, %c0_2] : memref<2080x32xf32, #tpu.memory_space<vmem>>, vector<2048x32xf32>
    %c2048 = arith.constant 2048 : index
    %c0_3 = arith.constant 0 : index
    %2 = vector.load %arg2[%c2048, %c0_3] : memref<2080x32xf32, #tpu.memory_space<vmem>>, vector<32x32xf32>
    %c0_4 = arith.constant 0 : index
    %c0_5 = arith.constant 0 : index
    %3 = vector.load %arg3[%c0_4, %c0_5] : memref<33x2048xf32, #tpu.memory_space<vmem>>, vector<32x2048xf32>
    %c32 = arith.constant 32 : index
    %c0_6 = arith.constant 0 : index
    %4 = vector.load %arg3[%c32, %c0_6] : memref<33x2048xf32, #tpu.memory_space<vmem>>, vector<1x2048xf32>
    %cst = arith.constant dense<0.000000e+00> : vector<8x32xf32>
    %5 = tpu.matmul %0, %1, %cst {dimension_numbers = #tpu.dot_dimension_numbers<[1], [0], [0], [1], [0, 0, 1, 1], [], []>} : vector<8x2048xf32>, vector<2048x32xf32>, vector<8x32xf32> -> vector<8x32xf32>
    %cst_7 = arith.constant dense<0.000000e+00> : vector<8x32xf32>
    %6 = tpu.matmul %5, %2, %cst_7 {dimension_numbers = #tpu.dot_dimension_numbers<[1], [0], [0], [1], [0, 0, 1, 1], [], []>} : vector<8x32xf32>, vector<32x32xf32>, vector<8x32xf32> -> vector<8x32xf32>
    %7 = arith.subf %5, %6 : vector<8x32xf32>
    %8 = arith.mulf %7, %7 : vector<8x32xf32>
    %cst_8 = arith.constant dense<0.000000e+00> : vector<8x32xf32>
    %9 = tpu.matmul %8, %2, %cst_8 {dimension_numbers = #tpu.dot_dimension_numbers<[1], [0], [0], [1], [0, 0, 1, 1], [], []>} : vector<8x32xf32>, vector<32x32xf32>, vector<8x32xf32> -> vector<8x32xf32>
    %cst_9 = arith.constant 9.99999974E-6 : f32
    %10 = vector.broadcast %cst_9 : f32 to vector<8x32xf32>
    %11 = arith.addf %9, %10 : vector<8x32xf32>
    %12 = math.rsqrt %11 : vector<8x32xf32>
    %13 = arith.mulf %7, %12 : vector<8x32xf32>
    %cst_10 = arith.constant dense<0.000000e+00> : vector<8x2048xf32>
    %14 = tpu.matmul %13, %3, %cst_10 {dimension_numbers = #tpu.dot_dimension_numbers<[1], [0], [0], [1], [0, 0, 1, 1], [], []>} : vector<8x32xf32>, vector<32x2048xf32>, vector<8x2048xf32> -> vector<8x2048xf32>
    %15 = vector.broadcast %4 : vector<1x2048xf32> to vector<8x2048xf32>
    %16 = arith.addf %14, %15 : vector<8x2048xf32>
    %c0_11 = arith.constant 0 : index
    %c0_12 = arith.constant 0 : index
    %17 = vector.load %arg4[%c0_11, %c0_12] : memref<8x2048xf32, #tpu.memory_space<vmem>>, vector<8x2048xf32>
    tpu.vector_store %arg4[%c0_11, %c0_12], %16 {strides = array<i32>} : memref<8x2048xf32, #tpu.memory_space<vmem>>, vector<8x2048xf32>,
    return
  }
  func.func @transform_0(%arg0: i32) -> (i32, i32) {
    %c0_i32 = arith.constant 0 : i32
    %c0_i32_0 = arith.constant 0 : i32
    return %arg0, %c0_i32 : i32, i32
  }
  func.func @transform_1(%arg0: i32) -> (i32, i32) {
    %c0_i32 = arith.constant 0 : i32
    %c0_i32_0 = arith.constant 0 : i32
    %c0_i32_1 = arith.constant 0 : i32
    return %c0_i32, %c0_i32_0 : i32, i32
  }
  func.func @transform_2(%arg0: i32) -> (i32, i32) {
    %c0_i32 = arith.constant 0 : i32
    %c0_i32_0 = arith.constant 0 : i32
    %c0_i32_1 = arith.constant 0 : i32
    return %c0_i32, %c0_i32_0 : i32, i32
  }
  func.func @transform_3(%arg0: i32) -> (i32, i32) {
    %c0_i32 = arith.constant 0 : i32
    %c0_i32_0 = arith.constant 0 : i32
    return %arg0, %c0_i32 : i32, i32
  }
}

</mosaic_0001>

<bundles_post_ra>
// kernel: global_attention_forward.1
= control target key start
LH: loop header
LB: loop body
LE: loop exit
PB: predicated region body
PF: predicated region fallthrough
CT: control target
= control target key end

     0   :  { %s1400_s12 = smov 0   ;;  %s2495_s0 = inlined_call_operand.vmem [shape: f32[16,2048], index: 0, kind: input, shape index: {}]   ;;  %s2496_s1 = inlined_call_operand.vmem [shape: f32[2080,32], index: 1, kind: input, shape index: {}]   ;;  %s2497_s2 = inlined_call_operand.vmem [shape: f32[33,2048], index: 2, kind: input, shape index: {}]   ;;  %s2498_s3 = inlined_call_operand.vmem [shape: f32[16,2048], index: 3, kind: output, shape index: {}]  }
   0x1 LB: > { %s1327_s13 = sadd.s32 4294967295, %s1378_s12   ;;  %p1331_p0 = scmp.ge.s32.totalorder %s1378_s12, 1  ;;  %s1378_s12 = sphi %s1400_s12, %s13_s12  }
   0x2   : > { %p137_p1 = scmp.lt.s32.totalorder %s1378_s12, 3 }
   0x4   : > { %p138_p2 = pnand %p1331_p0, %p137_p1 }
   0x5   : > { %p1698_p3 = scmp.lt.s32.totalorder (!%p138_p2), %s1327_s13, 1 }
   0x6   : > { %141 = sbr.rel (%p138_p2) target bundleno = 720 (0x2d0), region = 32 }
   0xb   : > { %v202_v0 = vld [vmem:[%s2496_s1 + $0x78] sm:$0xff]  ;;  %v201_v2 = vld [vmem:[%s2496_s1 + $0x70] sm:$0xff]  ;;  %v200_v6 = vld [vmem:[%s2496_s1 + $0x68] sm:$0xff]  ;;  %s2501_s13 = smov (!%p1698_p3, %s1327_s13), 1  ;;  %vm839_vm0 = vcmask 261120  }
   0xc   : > { %v234_v1 = vld [vmem:[%s2496_s1 + $0x178] sm:$0xff]  ;;  %519 = vmatpush.msra.mxu0 %v202_v0  ;;  %v233_v4 = vld [vmem:[%s2496_s1 + $0x170] sm:$0xff]  ;;  %v232_v8 = vld [vmem:[%s2496_s1 + $0x168] sm:$0xff]  ;;  %s1360_s14 = sshll.u32 %s2501_s13, 7 }
   0xd   : > { %559 = vmatpush.msra.mxu2 %v234_v1  ;;  %v218_v3 = vld [vmem:[%s2496_s1 + $0xf8] sm:$0xff]  ;;  %v217_v7 = vld [vmem:[%s2496_s1 + $0xf0] sm:$0xff]  ;;  %v216_v10 = vld [vmem:[%s2496_s1 + $0xe8] sm:$0xff]  ;;  %s1780_s29 = scalar_lea.vmem %s2495_s0, %s1360_s14  ;;  %s2468_s27 = scalar_lea.vmem %s2498_s3, %s1360_s14 }
   0xe   : > { %v250_v5 = vld [vmem:[%s2496_s1 + $0x1f8] sm:$0xff]  ;;  %539 = vmatpush.msra.mxu1 %v218_v3  ;;  %520 = vmatpush.msra.mxu0 %v201_v2  ;;  %v249_v9 = vld [vmem:[%s2496_s1 + $0x1f0] sm:$0xff]  ;;  %v199_v11 = vld [vmem:[%s2496_s1 + $0x60] sm:$0xff] }
   0xf   : > { %579 = vmatpush.msra.mxu3 %v250_v5  ;;  %560 = vmatpush.msra.mxu2 %v233_v4  ;;  %v231_v12 = vld [vmem:[%s2496_s1 + $0x160] sm:$0xff]  ;;  %v248_v13 = vld [vmem:[%s2496_s1 + $0x1e8] sm:$0xff]  ;;  %v198_v16 = vld [vmem:[%s2496_s1 + $0x58] sm:$0xff] }
  0x10   : > { %540 = vmatpush.msra.mxu1 %v217_v7  ;;  %521 = vmatpush.msra.mxu0 %v200_v6  ;;  %v215_v14 = vld [vmem:[%s2496_s1 + $0xe0] sm:$0xff]  ;;  %v230_v17 = vld [vmem:[%s2496_s1 + $0x158] sm:$0xff]  ;;  %v197_v20 = vld [vmem:[%s2496_s1 + $0x50] sm:$0xff] }
  0x11   : > { %580 = vmatpush.msra.mxu3 %v249_v9  ;;  %561 = vmatpush.msra.mxu2 %v232_v8  ;;  %v247_v15 = vld [vmem:[%s2496_s1 + $0x1e0] sm:$0xff]  ;;  %v214_v18 = vld [vmem:[%s2496_s1 + $0xd8] sm:$0xff]  ;;  %v229_v21 = vld [vmem:[%s2496_s1 + $0x150] sm:$0xff] }
  0x12   : > { %541 = vmatpush.msra.mxu1 %v216_v10  ;;  %522 = vmatpush.msra.mxu0 %v199_v11  ;;  %v246_v19 = vld [vmem:[%s2496_s1 + $0x1d8] sm:$0xff]  ;;  %v213_v22 = vld [vmem:[%s2496_s1 + $0xd0] sm:$0xff]  ;;  %v196_v24 = vld [vmem:[%s2496_s1 + $0x48] sm:$0xff] }
  0x13   : > { %581 = vmatpush.msra.mxu3 %v248_v13  ;;  %562 = vmatpush.msra.mxu2 %v231_v12  ;;  %v245_v23 = vld [vmem:[%s2496_s1 + $0x1d0] sm:$0xff]  ;;  %v228_v25 = vld [vmem:[%s2496_s1 + $0x148] sm:$0xff]  ;;  %v195_v28 = vld [vmem:[%s2496_s1 + $0x40] sm:$0xff] }
  0x14   : > { %542 = vmatpush.msra.mxu1 %v215_v14  ;;  %523 = vmatpush.msra.mxu0 %v198_v16  ;;  %v212_v26 = vld [vmem:[%s2496_s1 + $0xc8] sm:$0xff]  ;;  %v227_v29 = vld [vmem:[%s2496_s1 + $0x140] sm:$0xff]  ;;  %v194_v32 = vld [vmem:[%s2496_s1 + $0x38] sm:$0xff] }
  0x15   : > { %582 = vmatpush.msra.mxu3 %v247_v15  ;;  %563 = vmatpush.msra.mxu2 %v230_v17  ;;  %v244_v27 = vld [vmem:[%s2496_s1 + $0x1c8] sm:$0xff]  ;;  %v211_v30 = vld [vmem:[%s2496_s1 + $0xc0] sm:$0xff]  ;;  %v226_v33 = vld [vmem:[%s2496_s1 + $0x138] sm:$0xff] }
  0x16   : > { %543 = vmatpush.msra.mxu1 %v214_v18  ;;  %524 = vmatpush.msra.mxu0 %v197_v20  ;;  %v243_v31 = vld [vmem:[%s2496_s1 + $0x1c0] sm:$0xff]  ;;  %v210_v34 = vld [vmem:[%s2496_s1 + $0xb8] sm:$0xff]  ;;  %v193_v36 = vld [vmem:[%s2496_s1 + $0x30] sm:$0xff] }
  0x17   : > { %583 = vmatpush.msra.mxu3 %v246_v19  ;;  %564 = vmatpush.msra.mxu2 %v229_v21  ;;  %v242_v35 = vld [vmem:[%s2496_s1 + $0x1b8] sm:$0xff]  ;;  %v225_v37 = vld [vmem:[%s2496_s1 + $0x130] sm:$0xff]  ;;  %v192_v40 = vld [vmem:[%s2496_s1 + $0x28] sm:$0xff] }
  0x18   : > { %544 = vmatpush.msra.mxu1 %v213_v22  ;;  %525 = vmatpush.msra.mxu0 %v196_v24  ;;  %v209_v38 = vld [vmem:[%s2496_s1 + $0xb0] sm:$0xff]  ;;  %v224_v41 = vld [vmem:[%s2496_s1 + $0x128] sm:$0xff]  ;;  %v191_v44 = vld [vmem:[%s2496_s1 + $0x20] sm:$0xff] }
  0x19   : > { %584 = vmatpush.msra.mxu3 %v245_v23  ;;  %565 = vmatpush.msra.mxu2 %v228_v25  ;;  %v241_v39 = vld [vmem:[%s2496_s1 + $0x1b0] sm:$0xff]  ;;  %v208_v42 = vld [vmem:[%s2496_s1 + $0xa8] sm:$0xff]  ;;  %v223_v45 = vld [vmem:[%s2496_s1 + $0x120] sm:$0xff] }
  0x1a   : > { %545 = vmatpush.msra.mxu1 %v212_v26  ;;  %526 = vmatpush.msra.mxu0 %v195_v28  ;;  %v240_v43 = vld [vmem:[%s2496_s1 + $0x1a8] sm:$0xff]  ;;  %v207_v46 = vld [vmem:[%s2496_s1 + $0xa0] sm:$0xff]  ;;  %v190_v48 = vld [vmem:[%s2496_s1 + $0x18] sm:$0xff] }
  0x1b   : > { %585 = vmatpush.msra.mxu3 %v244_v27  ;;  %566 = vmatpush.msra.mxu2 %v227_v29  ;;  %v239_v47 = vld [vmem:[%s2496_s1 + $0x1a0] sm:$0xff]  ;;  %v222_v49 = vld [vmem:[%s2496_s1 + $0x118] sm:$0xff]  ;;  %v189_v52 = vld [vmem:[%s2496_s1 + $0x10] sm:$0xff] }
  0x1c   : > { %546 = vmatpush.msra.mxu1 %v211_v30  ;;  %527 = vmatpush.msra.mxu0 %v194_v32  ;;  %v206_v50 = vld [vmem:[%s2496_s1 + $0x98] sm:$0xff]  ;;  %v221_v53 = vld [vmem:[%s2496_s1 + $0x110] sm:$0xff]  ;;  %v188_v56 = vld [vmem:[%s2496_s1 + $0x8] sm:$0xff] }
  0x1d   : > { %586 = vmatpush.msra.mxu3 %v243_v31  ;;  %567 = vmatpush.msra.mxu2 %v226_v33  ;;  %v238_v51 = vld [vmem:[%s2496_s1 + $0x198] sm:$0xff]  ;;  %v205_v54 = vld [vmem:[%s2496_s1 + $0x90] sm:$0xff]  ;;  %v220_v57 = vld [vmem:[%s2496_s1 + $0x108] sm:$0xff] }
  0x1e   : > { %547 = vmatpush.msra.mxu1 %v210_v34  ;;  %528 = vmatpush.msra.mxu0 %v193_v36  ;;  %v237_v55 = vld [vmem:[%s2496_s1 + $0x190] sm:$0xff]  ;;  %v204_v58 = vld [vmem:[%s2496_s1 + $0x88] sm:$0xff]  ;;  %v187_v60 = vld [vmem:[%s2496_s1] sm:$0xff] }
  0x1f   : > { %587 = vmatpush.msra.mxu3 %v242_v35  ;;  %568 = vmatpush.msra.mxu2 %v225_v37  ;;  %v236_v59 = vld [vmem:[%s2496_s1 + $0x188] sm:$0xff]  ;;  %v219_v61 = vld [vmem:[%s2496_s1 + $0x100] sm:$0xff]  ;;  %v266_v62 = vld [vmem:[%s2496_s1 + $0x278] sm:$0xff] }
  0x20   : > { %548 = vmatpush.msra.mxu1 %v209_v38  ;;  %529 = vmatpush.msra.mxu0 %v192_v40  ;;  %v298_v63 = vld [vmem:[%s2496_s1 + $0x378] sm:$0xff]  ;;  %v203_v0 = vld [vmem:[%s2496_s1 + $0x80] sm:$0xff]  ;;  %v265_v2 = vld [vmem:[%s2496_s1 + $0x270] sm:$0xff] }
  0x21   : > { %588 = vmatpush.msra.mxu3 %v241_v39  ;;  %569 = vmatpush.msra.mxu2 %v224_v41  ;;  %v235_v1 = vld [vmem:[%s2496_s1 + $0x180] sm:$0xff]  ;;  %v282_v3 = vld [vmem:[%s2496_s1 + $0x2f8] sm:$0xff]  ;;  %v297_v4 = vld [vmem:[%s2496_s1 + $0x370] sm:$0xff] }
  0x22   : > { %549 = vmatpush.msra.mxu1 %v208_v42  ;;  %530 = vmatpush.msra.mxu0 %v191_v44  ;;  %v314_v5 = vld [vmem:[%s2496_s1 + $0x3f8] sm:$0xff]  ;;  %v264_v6 = vld [vmem:[%s2496_s1 + $0x268] sm:$0xff]  ;;  %v281_v7 = vld [vmem:[%s2496_s1 + $0x2f0] sm:$0xff] }
  0x23   : > { %589 = vmatpush.msra.mxu3 %v240_v43  ;;  %570 = vmatpush.msra.mxu2 %v223_v45  ;;  %v296_v8 = vld [vmem:[%s2496_s1 + $0x368] sm:$0xff]  ;;  %v313_v9 = vld [vmem:[%s2496_s1 + $0x3f0] sm:$0xff]  ;;  %v263_v10 = vld [vmem:[%s2496_s1 + $0x260] sm:$0xff] }
  0x24   : > { %550 = vmatpush.msra.mxu1 %v207_v46  ;;  %531 = vmatpush.msra.mxu0 %v190_v48  ;;  %v280_v11 = vld [vmem:[%s2496_s1 + $0x2e8] sm:$0xff]  ;;  %v295_v12 = vld [vmem:[%s2496_s1 + $0x360] sm:$0xff]  ;;  %v262_v14 = vld [vmem:[%s2496_s1 + $0x258] sm:$0xff] }
  0x25   : > { %590 = vmatpush.msra.mxu3 %v239_v47  ;;  %571 = vmatpush.msra.mxu2 %v222_v49  ;;  %v312_v13 = vld [vmem:[%s2496_s1 + $0x3e8] sm:$0xff]  ;;  %v279_v15 = vld [vmem:[%s2496_s1 + $0x2e0] sm:$0xff]  ;;  %v294_v16 = vld [vmem:[%s2496_s1 + $0x358] sm:$0xff] }
  0x26   : > { %551 = vmatpush.msra.mxu1 %v206_v50  ;;  %532 = vmatpush.msra.mxu0 %v189_v52  ;;  %v311_v17 = vld [vmem:[%s2496_s1 + $0x3e0] sm:$0xff]  ;;  %v261_v18 = vld [vmem:[%s2496_s1 + $0x250] sm:$0xff]  ;;  %v278_v19 = vld [vmem:[%s2496_s1 + $0x2d8] sm:$0xff] }
  0x27   : > { %591 = vmatpush.msra.mxu3 %v238_v51  ;;  %572 = vmatpush.msra.mxu2 %v221_v53  ;;  %v293_v20 = vld [vmem:[%s2496_s1 + $0x350] sm:$0xff]  ;;  %v310_v21 = vld [vmem:[%s2496_s1 + $0x3d8] sm:$0xff]  ;;  %v260_v22 = vld [vmem:[%s2496_s1 + $0x248] sm:$0xff] }
  0x28   : > { %552 = vmatpush.msra.mxu1 %v205_v54  ;;  %533 = vmatpush.msra.mxu0 %v188_v56  ;;  %v277_v23 = vld [vmem:[%s2496_s1 + $0x2d0] sm:$0xff]  ;;  %v292_v24 = vld [vmem:[%s2496_s1 + $0x348] sm:$0xff]  ;;  %v259_v26 = vld [vmem:[%s2496_s1 + $0x240] sm:$0xff] }
  0x29   : > { %592 = vmatpush.msra.mxu3 %v237_v55  ;;  %573 = vmatpush.msra.mxu2 %v220_v57  ;;  %v309_v25 = vld [vmem:[%s2496_s1 + $0x3d0] sm:$0xff]  ;;  %v276_v27 = vld [vmem:[%s2496_s1 + $0x2c8] sm:$0xff]  ;;  %v291_v28 = vld [vmem:[%s2496_s1 + $0x340] sm:$0xff] }
  0x2a   : > { %553 = vmatpush.msra.mxu1 %v204_v58  ;;  %534 = vmatpush.msra.mxu0 %v187_v60  ;;  %v308_v29 = vld [vmem:[%s2496_s1 + $0x3c8] sm:$0xff]  ;;  %v258_v30 = vld [vmem:[%s2496_s1 + $0x238] sm:$0xff]  ;;  %v275_v31 = vld [vmem:[%s2496_s1 + $0x2c0] sm:$0xff] }
  0x2b   : > { %593 = vmatpush.msra.mxu3 %v236_v59  ;;  %574 = vmatpush.msra.mxu2 %v219_v61  ;;  %v290_v32 = vld [vmem:[%s2496_s1 + $0x338] sm:$0xff]  ;;  %v307_v33 = vld [vmem:[%s2496_s1 + $0x3c0] sm:$0xff]  ;;  %v257_v34 = vld [vmem:[%s2496_s1 + $0x230] sm:$0xff] }
  0x2c   : > { %599 = vmatpush.msrb.mxu0 %v266_v62  ;;  %554 = vmatpush.msra.mxu1 %v203_v0  ;;  %v274_v35 = vld [vmem:[%s2496_s1 + $0x2b8] sm:$0xff]  ;;  %v289_v36 = vld [vmem:[%s2496_s1 + $0x330] sm:$0xff]  ;;  %v256_v38 = vld [vmem:[%s2496_s1 + $0x228] sm:$0xff] }
  0x2d   : > { %639 = vmatpush.msrb.mxu2 %v298_v63  ;;  %594 = vmatpush.msra.mxu3 %v235_v1  ;;  %v306_v37 = vld [vmem:[%s2496_s1 + $0x3b8] sm:$0xff]  ;;  %v273_v39 = vld [vmem:[%s2496_s1 + $0x2b0] sm:$0xff]  ;;  %v288_v40 = vld [vmem:[%s2496_s1 + $0x328] sm:$0xff] }
  0x2e   : > { %600 = vmatpush.msrb.mxu0 %v265_v2  ;;  %619 = vmatpush.msrb.mxu1 %v282_v3  ;;  %v305_v41 = vld [vmem:[%s2496_s1 + $0x3b0] sm:$0xff]  ;;  %v255_v42 = vld [vmem:[%s2496_s1 + $0x220] sm:$0xff]  ;;  %v272_v43 = vld [vmem:[%s2496_s1 + $0x2a8] sm:$0xff] }
  0x2f   : > { %640 = vmatpush.msrb.mxu2 %v297_v4  ;;  %659 = vmatpush.msrb.mxu3 %v314_v5  ;;  %v287_v44 = vld [vmem:[%s2496_s1 + $0x320] sm:$0xff]  ;;  %v304_v45 = vld [vmem:[%s2496_s1 + $0x3a8] sm:$0xff]  ;;  %v254_v46 = vld [vmem:[%s2496_s1 + $0x218] sm:$0xff] }
  0x30   : > { %601 = vmatpush.msrb.mxu0 %v264_v6  ;;  %620 = vmatpush.msrb.mxu1 %v281_v7  ;;  %v271_v47 = vld [vmem:[%s2496_s1 + $0x2a0] sm:$0xff]  ;;  %v286_v48 = vld [vmem:[%s2496_s1 + $0x318] sm:$0xff]  ;;  %v253_v50 = vld [vmem:[%s2496_s1 + $0x210] sm:$0xff] }
  0x31   : > { %641 = vmatpush.msrb.mxu2 %v296_v8  ;;  %660 = vmatpush.msrb.mxu3 %v313_v9  ;;  %v303_v49 = vld [vmem:[%s2496_s1 + $0x3a0] sm:$0xff]  ;;  %v270_v51 = vld [vmem:[%s2496_s1 + $0x298] sm:$0xff]  ;;  %v285_v52 = vld [vmem:[%s2496_s1 + $0x310] sm:$0xff] }
  0x32   : > { %602 = vmatpush.msrb.mxu0 %v263_v10  ;;  %621 = vmatpush.msrb.mxu1 %v280_v11  ;;  %v302_v53 = vld [vmem:[%s2496_s1 + $0x398] sm:$0xff]  ;;  %v252_v54 = vld [vmem:[%s2496_s1 + $0x208] sm:$0xff]  ;;  %v269_v55 = vld [vmem:[%s2496_s1 + $0x290] sm:$0xff] }
  0x33   : > { %642 = vmatpush.msrb.mxu2 %v295_v12  ;;  %661 = vmatpush.msrb.mxu3 %v312_v13  ;;  %v284_v56 = vld [vmem:[%s2496_s1 + $0x308] sm:$0xff]  ;;  %v301_v57 = vld [vmem:[%s2496_s1 + $0x390] sm:$0xff]  ;;  %v251_v59 = vld [vmem:[%s2496_s1 + $0x200] sm:$0xff] }
  0x34   : > { %603 = vmatpush.msrb.mxu0 %v262_v14  ;;  %622 = vmatpush.msrb.mxu1 %v279_v15  ;;  %v173_v58 = vld [vmem:[%s1780_s29 + $0x10] sm:$0xff]  ;;  %v268_v60 = vld [vmem:[%s2496_s1 + $0x288] sm:$0xff]  ;;  %v283_v61 = vld [vmem:[%s2496_s1 + $0x300] sm:$0xff] }
  0x35   : > { %643 = vmatpush.msrb.mxu2 %v294_v16  ;;  %662 = vmatpush.msrb.mxu3 %v311_v17  ;;  %v300_v62 = vld [vmem:[%s2496_s1 + $0x388] sm:$0xff]  ;;  %v171_v63 = vld [vmem:[%s1780_s29] sm:$0xff]  ;;  %v174_v0 = vld [vmem:[%s1780_s29 + $0x18] sm:$0xff] }
  0x36   : > { %604 = vmatpush.msrb.mxu0 %v261_v18  ;;  %623 = vmatpush.msrb.mxu1 %v278_v19  ;;  %v330_v1 = vld [vmem:[%s2496_s1 + $0x478] sm:$0xff]  ;;  %v267_v3 = vld [vmem:[%s2496_s1 + $0x280] sm:$0xff]  ;;  %v172_v5 = vld [vmem:[%s1780_s29 + $0x8] sm:$0xff] }
  0x37   : > { %644 = vmatpush.msrb.mxu2 %v293_v20  ;;  %663 = vmatpush.msrb.mxu3 %v310_v21  ;;  %v362_v2 = vld [vmem:[%s2496_s1 + $0x578] sm:$0xff]  ;;  %v299_v4 = vld [vmem:[%s2496_s1 + $0x380] sm:$0xff]  ;;  %v329_v6 = vld [vmem:[%s2496_s1 + $0x470] sm:$0xff] }
  0x38   : > { %605 = vmatpush.msrb.mxu0 %v260_v22  ;;  %624 = vmatpush.msrb.mxu1 %v277_v23  ;;  %v346_v7 = vld [vmem:[%s2496_s1 + $0x4f8] sm:$0xff]  ;;  %v361_v8 = vld [vmem:[%s2496_s1 + $0x570] sm:$0xff]  ;;  %v328_v10 = vld [vmem:[%s2496_s1 + $0x468] sm:$0xff] }
  0x39   : > { %645 = vmatpush.msrb.mxu2 %v292_v24  ;;  %664 = vmatpush.msrb.mxu3 %v309_v25  ;;  %v378_v9 = vld [vmem:[%s2496_s1 + $0x5f8] sm:$0xff]  ;;  %v345_v11 = vld [vmem:[%s2496_s1 + $0x4f0] sm:$0xff]  ;;  %v360_v12 = vld [vmem:[%s2496_s1 + $0x568] sm:$0xff] }
  0x3a   : > { %606 = vmatpush.msrb.mxu0 %v259_v26  ;;  %625 = vmatpush.msrb.mxu1 %v276_v27  ;;  %v377_v13 = vld [vmem:[%s2496_s1 + $0x5f0] sm:$0xff]  ;;  %v327_v15 = vld [vmem:[%s2496_s1 + $0x460] sm:$0xff]  ;;  %v344_v16 = vld [vmem:[%s2496_s1 + $0x4e8] sm:$0xff] }
  0x3b   : > { %646 = vmatpush.msrb.mxu2 %v291_v28  ;;  %665 = vmatpush.msrb.mxu3 %v308_v29  ;;  %v177_v14 = vld [vmem:[%s1780_s29 + $0x30] sm:$0xff]  ;;  %v359_v17 = vld [vmem:[%s2496_s1 + $0x560] sm:$0xff]  ;;  %v376_v18 = vld [vmem:[%s2496_s1 + $0x5e8] sm:$0xff] }
  0x3c   : > { %607 = vmatpush.msrb.mxu0 %v258_v30  ;;  %626 = vmatpush.msrb.mxu1 %v275_v31  ;;  %v175_v19 = vld [vmem:[%s1780_s29 + $0x20] sm:$0xff]  ;;  %v178_v20 = vld [vmem:[%s1780_s29 + $0x38] sm:$0xff]  ;;  %v176_v25 = vld [vmem:[%s1780_s29 + $0x28] sm:$0xff] }
  0x3d   : > { %647 = vmatpush.msrb.mxu2 %v290_v32  ;;  %666 = vmatpush.msrb.mxu3 %v307_v33  ;;  %v326_v21 = vld [vmem:[%s2496_s1 + $0x458] sm:$0xff]  ;;  %v343_v22 = vld [vmem:[%s2496_s1 + $0x4e0] sm:$0xff]  ;;  %v325_v26 = vld [vmem:[%s2496_s1 + $0x450] sm:$0xff] }
  0x3e   : > { %608 = vmatpush.msrb.mxu0 %v257_v34  ;;  %627 = vmatpush.msrb.mxu1 %v274_v35  ;;  %v358_v23 = vld [vmem:[%s2496_s1 + $0x558] sm:$0xff]  ;;  %v375_v24 = vld [vmem:[%s2496_s1 + $0x5e0] sm:$0xff]  ;;  %v357_v28 = vld [vmem:[%s2496_s1 + $0x550] sm:$0xff] }
  0x3f   : > { %648 = vmatpush.msrb.mxu2 %v289_v36  ;;  %667 = vmatpush.msrb.mxu3 %v306_v37  ;;  %v342_v27 = vld [vmem:[%s2496_s1 + $0x4d8] sm:$0xff]  ;;  %v324_v30 = vld [vmem:[%s2496_s1 + $0x448] sm:$0xff]  ;;  %v341_v31 = vld [vmem:[%s2496_s1 + $0x4d0] sm:$0xff] }
  0x40   : > { %609 = vmatpush.msrb.mxu0 %v256_v38  ;;  %628 = vmatpush.msrb.mxu1 %v273_v39  ;;  %v374_v29 = vld [vmem:[%s2496_s1 + $0x5d8] sm:$0xff]  ;;  %v356_v32 = vld [vmem:[%s2496_s1 + $0x548] sm:$0xff]  ;;  %v373_v33 = vld [vmem:[%s2496_s1 + $0x5d0] sm:$0xff] }
  0x41   : > { %649 = vmatpush.msrb.mxu2 %v288_v40  ;;  %668 = vmatpush.msrb.mxu3 %v305_v41  ;;  %v323_v34 = vld [vmem:[%s2496_s1 + $0x440] sm:$0xff]  ;;  %v340_v35 = vld [vmem:[%s2496_s1 + $0x4c8] sm:$0xff]  ;;  %v322_v38 = vld [vmem:[%s2496_s1 + $0x438] sm:$0xff] }
  0x42   : > { %610 = vmatpush.msrb.mxu0 %v255_v42  ;;  %629 = vmatpush.msrb.mxu1 %v272_v43  ;;  %v355_v36 = vld [vmem:[%s2496_s1 + $0x540] sm:$0xff]  ;;  %v372_v37 = vld [vmem:[%s2496_s1 + $0x5c8] sm:$0xff]  ;;  %v354_v40 = vld [vmem:[%s2496_s1 + $0x538] sm:$0xff] }
  0x43   : > { %650 = vmatpush.msrb.mxu2 %v287_v44  ;;  %669 = vmatpush.msrb.mxu3 %v304_v45  ;;  %v339_v39 = vld [vmem:[%s2496_s1 + $0x4c0] sm:$0xff]  ;;  %v321_v42 = vld [vmem:[%s2496_s1 + $0x430] sm:$0xff]  ;;  %v338_v43 = vld [vmem:[%s2496_s1 + $0x4b8] sm:$0xff] }
  0x44   : > { %611 = vmatpush.msrb.mxu0 %v254_v46  ;;  %630 = vmatpush.msrb.mxu1 %v271_v47  ;;  %v371_v41 = vld [vmem:[%s2496_s1 + $0x5c0] sm:$0xff]  ;;  %v353_v44 = vld [vmem:[%s2496_s1 + $0x530] sm:$0xff]  ;;  %v370_v45 = vld [vmem:[%s2496_s1 + $0x5b8] sm:$0xff] }
  0x45   : > { %651 = vmatpush.msrb.mxu2 %v286_v48  ;;  %670 = vmatpush.msrb.mxu3 %v303_v49  ;;  %v320_v46 = vld [vmem:[%s2496_s1 + $0x428] sm:$0xff]  ;;  %v337_v47 = vld [vmem:[%s2496_s1 + $0x4b0] sm:$0xff] }
  0x46   : > { %612 = vmatpush.msrb.mxu0 %v253_v50  ;;  %631 = vmatpush.msrb.mxu1 %v270_v51  ;;  %v352_v48 = vld [vmem:[%s2496_s1 + $0x528] sm:$0xff]  ;;  %v369_v49 = vld [vmem:[%s2496_s1 + $0x5b0] sm:$0xff]  ;;  %v319_v50 = vld [vmem:[%s2496_s1 + $0x420] sm:$0xff] }
  0x47   : > { %652 = vmatpush.msrb.mxu2 %v285_v52  ;;  %671 = vmatpush.msrb.mxu3 %v302_v53  ;;  %v336_v51 = vld [vmem:[%s2496_s1 + $0x4a8] sm:$0xff]  ;;  %v351_v52 = vld [vmem:[%s2496_s1 + $0x520] sm:$0xff] }
  0x48   : > { %613 = vmatpush.msrb.mxu0 %v252_v54  ;;  %632 = vmatpush.msrb.mxu1 %v269_v55  ;;  %v368_v53 = vld [vmem:[%s2496_s1 + $0x5a8] sm:$0xff]  ;;  %v318_v54 = vld [vmem:[%s2496_s1 + $0x418] sm:$0xff]  ;;  %v335_v55 = vld [vmem:[%s2496_s1 + $0x4a0] sm:$0xff] }
  0x49   : > { %653 = vmatpush.msrb.mxu2 %v284_v56  ;;  %672 = vmatpush.msrb.mxu3 %v301_v57  ;;  %v350_v56 = vld [vmem:[%s2496_s1 + $0x518] sm:$0xff]  ;;  %v367_v57 = vld [vmem:[%s2496_s1 + $0x5a0] sm:$0xff] }
  0x4a   : > { %575 = vmatmul.f32.vlgmr.msra.gmra.mxu2 %v173_v58  ;;  %614 = vmatpush.msrb.mxu0 %v251_v59  ;;  %v317_v58 = vld [vmem:[%s2496_s1 + $0x410] sm:$0xff]  ;;  %v334_v59 = vld [vmem:[%s2496_s1 + $0x498] sm:$0xff] }
  0x4b   : > { %633 = vmatpush.msrb.mxu1 %v268_v60  ;;  %654 = vmatpush.msrb.mxu2 %v283_v61  ;;  %v349_v60 = vld [vmem:[%s2496_s1 + $0x510] sm:$0xff]  ;;  %v366_v61 = vld [vmem:[%s2496_s1 + $0x598] sm:$0xff] }
  0x4c   : > { %673 = vmatpush.msrb.mxu3 %v300_v62  ;;  %535 = vmatmul.f32.vlgmr.msra.gmra.mxu0 %v171_v63  ;;  %v316_v62 = vld [vmem:[%s2496_s1 + $0x408] sm:$0xff]  ;;  %v333_v63 = vld [vmem:[%s2496_s1 + $0x490] sm:$0xff] }
  0x4d   : > { %595 = vmatmul.f32.vlgmr.msra.gmra.mxu3 %v174_v0  ;;  %679 = vmatpush.msra.mxu0 %v330_v1  ;;  %v348_v0 = vld [vmem:[%s2496_s1 + $0x508] sm:$0xff]  ;;  %v365_v1 = vld [vmem:[%s2496_s1 + $0x590] sm:$0xff] }
  0x4e   : > { %719 = vmatpush.msra.mxu2 %v362_v2  ;;  %634 = vmatpush.msrb.mxu1 %v267_v3  ;;  %v315_v2 = vld [vmem:[%s2496_s1 + $0x400] sm:$0xff]  ;;  %v332_v3 = vld [vmem:[%s2496_s1 + $0x488] sm:$0xff] }
  0x4f   : > { %674 = vmatpush.msrb.mxu3 %v299_v4  ;;  %555 = vmatmul.f32.vlgmr.msra.gmra.mxu1 %v172_v5  ;;  %v347_v4 = vld [vmem:[%s2496_s1 + $0x500] sm:$0xff]  ;;  %v364_v5 = vld [vmem:[%s2496_s1 + $0x588] sm:$0xff] }
  0x50   : > { %680 = vmatpush.msra.mxu0 %v329_v6  ;;  %699 = vmatpush.msra.mxu1 %v346_v7  ;;  %v179_v6 = vld [vmem:[%s1780_s29 + $0x40] sm:$0xff]  ;;  %v181_v7 = vld [vmem:[%s1780_s29 + $0x50] sm:$0xff] }
  0x51   : > { %720 = vmatpush.msra.mxu2 %v361_v8  ;;  %739 = vmatpush.msra.mxu3 %v378_v9  ;;  %v394_v8 = vld [vmem:[%s2496_s1 + $0x678] sm:$0xff] }
  0x52   : > { %681 = vmatpush.msra.mxu0 %v328_v10  ;;  %700 = vmatpush.msra.mxu1 %v345_v11  ;;  %v426_v9 = vld [vmem:[%s2496_s1 + $0x778] sm:$0xff]  ;;  %v331_v10 = vld [vmem:[%s2496_s1 + $0x480] sm:$0xff] }
  0x53   : > { %721 = vmatpush.msra.mxu2 %v360_v12  ;;  %740 = vmatpush.msra.mxu3 %v377_v13  ;;  %v363_v11 = vld [vmem:[%s2496_s1 + $0x580] sm:$0xff]  ;;  %v180_v12 = vld [vmem:[%s1780_s29 + $0x48] sm:$0xff]  ;;  %v182_v13 = vld [vmem:[%s1780_s29 + $0x58] sm:$0xff] }
  0x54   : > { %655 = vmatmul.f32.vlgmr.msrb.gmra.mxu2 %v177_v14  ;;  %682 = vmatpush.msra.mxu0 %v327_v15  ;;  %v393_v14 = vld [vmem:[%s2496_s1 + $0x670] sm:$0xff]  ;;  %v410_v15 = vld [vmem:[%s2496_s1 + $0x6f8] sm:$0xff] }
  0x55   : > { %701 = vmatpush.msra.mxu1 %v344_v16  ;;  %722 = vmatpush.msra.mxu2 %v359_v17  ;;  %v425_v16 = vld [vmem:[%s2496_s1 + $0x770] sm:$0xff]  ;;  %v442_v17 = vld [vmem:[%s2496_s1 + $0x7f8] sm:$0xff] }
  0x56   : > { %741 = vmatpush.msra.mxu3 %v376_v18  ;;  %615 = vmatmul.f32.vlgmr.msrb.gmra.mxu0 %v175_v19  ;;  %v392_v18 = vld [vmem:[%s2496_s1 + $0x668] sm:$0xff]  ;;  %v409_v19 = vld [vmem:[%s2496_s1 + $0x6f0] sm:$0xff] }
  0x57   : > { %675 = vmatmul.f32.vlgmr.msrb.gmra.mxu3 %v178_v20  ;;  %683 = vmatpush.msra.mxu0 %v326_v21  ;;  %v424_v20 = vld [vmem:[%s2496_s1 + $0x768] sm:$0xff]  ;;  %v441_v21 = vld [vmem:[%s2496_s1 + $0x7f0] sm:$0xff] }
  0x58   : > { %702 = vmatpush.msra.mxu1 %v343_v22  ;;  %723 = vmatpush.msra.mxu2 %v358_v23  ;;  %v391_v22 = vld [vmem:[%s2496_s1 + $0x660] sm:$0xff]  ;;  %v408_v23 = vld [vmem:[%s2496_s1 + $0x6e8] sm:$0xff] }
  0x59   : > { %742 = vmatpush.msra.mxu3 %v375_v24  ;;  %635 = vmatmul.f32.vlgmr.msrb.gmra.mxu1 %v176_v25  ;;  %v423_v24 = vld [vmem:[%s2496_s1 + $0x760] sm:$0xff]  ;;  %v440_v25 = vld [vmem:[%s2496_s1 + $0x7e8] sm:$0xff] }
  0x5a   : > { %684 = vmatpush.msra.mxu0 %v325_v26  ;;  %703 = vmatpush.msra.mxu1 %v342_v27  ;;  %v390_v26 = vld [vmem:[%s2496_s1 + $0x658] sm:$0xff]  ;;  %v407_v27 = vld [vmem:[%s2496_s1 + $0x6e0] sm:$0xff] }
  0x5b   : > { %724 = vmatpush.msra.mxu2 %v357_v28  ;;  %743 = vmatpush.msra.mxu3 %v374_v29  ;;  %v422_v28 = vld [vmem:[%s2496_s1 + $0x758] sm:$0xff]  ;;  %v439_v29 = vld [vmem:[%s2496_s1 + $0x7e0] sm:$0xff] }
  0x5c   : > { %685 = vmatpush.msra.mxu0 %v324_v30  ;;  %704 = vmatpush.msra.mxu1 %v341_v31  ;;  %v389_v30 = vld [vmem:[%s2496_s1 + $0x650] sm:$0xff]  ;;  %v406_v31 = vld [vmem:[%s2496_s1 + $0x6d8] sm:$0xff] }
  0x5d   : > { %725 = vmatpush.msra.mxu2 %v356_v32  ;;  %744 = vmatpush.msra.mxu3 %v373_v33  ;;  %v421_v32 = vld [vmem:[%s2496_s1 + $0x750] sm:$0xff]  ;;  %v438_v33 = vld [vmem:[%s2496_s1 + $0x7d8] sm:$0xff] }
  0x5e   : > { %686 = vmatpush.msra.mxu0 %v323_v34  ;;  %705 = vmatpush.msra.mxu1 %v340_v35  ;;  %v388_v34 = vld [vmem:[%s2496_s1 + $0x648] sm:$0xff]  ;;  %v405_v35 = vld [vmem:[%s2496_s1 + $0x6d0] sm:$0xff] }
  0x5f   : > { %726 = vmatpush.msra.mxu2 %v355_v36  ;;  %745 = vmatpush.msra.mxu3 %v372_v37  ;;  %v420_v36 = vld [vmem:[%s2496_s1 + $0x748] sm:$0xff]  ;;  %v437_v37 = vld [vmem:[%s2496_s1 + $0x7d0] sm:$0xff] }
  0x60   : > { %687 = vmatpush.msra.mxu0 %v322_v38  ;;  %706 = vmatpush.msra.mxu1 %v339_v39  ;;  %v387_v38 = vld [vmem:[%s2496_s1 + $0x640] sm:$0xff]  ;;  %v404_v39 = vld [vmem:[%s2496_s1 + $0x6c8] sm:$0xff] }
  0x61   : > { %727 = vmatpush.msra.mxu2 %v354_v40  ;;  %746 = vmatpush.msra.mxu3 %v371_v41  ;;  %v419_v40 = vld [vmem:[%s2496_s1 + $0x740] sm:$0xff]  ;;  %v436_v41 = vld [vmem:[%s2496_s1 + $0x7c8] sm:$0xff] }
  0x62   : > { %688 = vmatpush.msra.mxu0 %v321_v42  ;;  %707 = vmatpush.msra.mxu1 %v338_v43  ;;  %v386_v42 = vld [vmem:[%s2496_s1 + $0x638] sm:$0xff]  ;;  %v403_v43 = vld [vmem:[%s2496_s1 + $0x6c0] sm:$0xff] }
  0x63   : > { %728 = vmatpush.msra.mxu2 %v353_v44  ;;  %747 = vmatpush.msra.mxu3 %v370_v45  ;;  %v418_v44 = vld [vmem:[%s2496_s1 + $0x738] sm:$0xff]  ;;  %v435_v45 = vld [vmem:[%s2496_s1 + $0x7c0] sm:$0xff] }
  0x64   : > { %689 = vmatpush.msra.mxu0 %v320_v46  ;;  %708 = vmatpush.msra.mxu1 %v337_v47  ;;  %v385_v46 = vld [vmem:[%s2496_s1 + $0x630] sm:$0xff]  ;;  %v402_v47 = vld [vmem:[%s2496_s1 + $0x6b8] sm:$0xff] }
  0x65   : > { %729 = vmatpush.msra.mxu2 %v352_v48  ;;  %748 = vmatpush.msra.mxu3 %v369_v49  ;;  %v417_v48 = vld [vmem:[%s2496_s1 + $0x730] sm:$0xff]  ;;  %v434_v49 = vld [vmem:[%s2496_s1 + $0x7b8] sm:$0xff] }
  0x66   : > { %690 = vmatpush.msra.mxu0 %v319_v50  ;;  %709 = vmatpush.msra.mxu1 %v336_v51  ;;  %v384_v50 = vld [vmem:[%s2496_s1 + $0x628] sm:$0xff]  ;;  %v401_v51 = vld [vmem:[%s2496_s1 + $0x6b0] sm:$0xff] }
  0x67   : > { %730 = vmatpush.msra.mxu2 %v351_v52  ;;  %749 = vmatpush.msra.mxu3 %v368_v53  ;;  %v416_v52 = vld [vmem:[%s2496_s1 + $0x728] sm:$0xff]  ;;  %v433_v53 = vld [vmem:[%s2496_s1 + $0x7b0] sm:$0xff] }
  0x68   : > { %691 = vmatpush.msra.mxu0 %v318_v54  ;;  %710 = vmatpush.msra.mxu1 %v335_v55  ;;  %v383_v54 = vld [vmem:[%s2496_s1 + $0x620] sm:$0xff]  ;;  %v400_v55 = vld [vmem:[%s2496_s1 + $0x6a8] sm:$0xff] }
  0x69   : > { %731 = vmatpush.msra.mxu2 %v350_v56  ;;  %750 = vmatpush.msra.mxu3 %v367_v57  ;;  %v415_v56 = vld [vmem:[%s2496_s1 + $0x720] sm:$0xff]  ;;  %v432_v57 = vld [vmem:[%s2496_s1 + $0x7a8] sm:$0xff] }
  0x6a   : > { %692 = vmatpush.msra.mxu0 %v317_v58  ;;  %711 = vmatpush.msra.mxu1 %v334_v59  ;;  %v382_v58 = vld [vmem:[%s2496_s1 + $0x618] sm:$0xff]  ;;  %v399_v59 = vld [vmem:[%s2496_s1 + $0x6a0] sm:$0xff] }
  0x6b   : > { %732 = vmatpush.msra.mxu2 %v349_v60  ;;  %751 = vmatpush.msra.mxu3 %v366_v61  ;;  %v414_v60 = vld [vmem:[%s2496_s1 + $0x718] sm:$0xff]  ;;  %v431_v61 = vld [vmem:[%s2496_s1 + $0x7a0] sm:$0xff] }
  0x6c   : > { %693 = vmatpush.msra.mxu0 %v316_v62  ;;  %712 = vmatpush.msra.mxu1 %v333_v63  ;;  %v381_v62 = vld [vmem:[%s2496_s1 + $0x610] sm:$0xff]  ;;  %v398_v63 = vld [vmem:[%s2496_s1 + $0x698] sm:$0xff] }
  0x6d   : > { %733 = vmatpush.msra.mxu2 %v348_v0  ;;  %752 = vmatpush.msra.mxu3 %v365_v1  ;;  %v413_v0 = vld [vmem:[%s2496_s1 + $0x710] sm:$0xff]  ;;  %v430_v1 = vld [vmem:[%s2496_s1 + $0x798] sm:$0xff] }
  0x6e   : > { %694 = vmatpush.msra.mxu0 %v315_v2  ;;  %713 = vmatpush.msra.mxu1 %v332_v3  ;;  %v380_v2 = vld [vmem:[%s2496_s1 + $0x608] sm:$0xff]  ;;  %v397_v3 = vld [vmem:[%s2496_s1 + $0x690] sm:$0xff] }
  0x6f   : > { %734 = vmatpush.msra.mxu2 %v347_v4  ;;  %753 = vmatpush.msra.mxu3 %v364_v5  ;;  %v412_v4 = vld [vmem:[%s2496_s1 + $0x708] sm:$0xff]  ;;  %v429_v5 = vld [vmem:[%s2496_s1 + $0x790] sm:$0xff] }
  0x70   : > { %695 = vmatmul.f32.vlgmr.msra.gmra.mxu0 %v179_v6  ;;  %735 = vmatmul.f32.vlgmr.msra.gmra.mxu2 %v181_v7  ;;  %v379_v6 = vld [vmem:[%s2496_s1 + $0x600] sm:$0xff]  ;;  %v396_v7 = vld [vmem:[%s2496_s1 + $0x688] sm:$0xff] }
  0x71   : > { %759 = vmatpush.msrb.mxu0 %v394_v8  ;;  %799 = vmatpush.msrb.mxu2 %v426_v9  ;;  %v411_v8 = vld [vmem:[%s2496_s1 + $0x700] sm:$0xff]  ;;  %v428_v9 = vld [vmem:[%s2496_s1 + $0x788] sm:$0xff] }
  0x72   : > { %714 = vmatpush.msra.mxu1 %v331_v10  ;;  %754 = vmatpush.msra.mxu3 %v363_v11  ;;  %v183_v10 = vld [vmem:[%s1780_s29 + $0x60] sm:$0xff]  ;;  %v185_v11 = vld [vmem:[%s1780_s29 + $0x70] sm:$0xff] }
  0x73   : > { %715 = vmatmul.f32.vlgmr.msra.gmra.mxu1 %v180_v12  ;;  %755 = vmatmul.f32.vlgmr.msra.gmra.mxu3 %v182_v13  ;;  %v395_v12 = vld [vmem:[%s2496_s1 + $0x680] sm:$0xff] }
  0x74   : > { %760 = vmatpush.msrb.mxu0 %v393_v14  ;;  %779 = vmatpush.msrb.mxu1 %v410_v15  ;;  %v427_v13 = vld [vmem:[%s2496_s1 + $0x780] sm:$0xff]  ;;  %v184_v14 = vld [vmem:[%s1780_s29 + $0x68] sm:$0xff]  ;;  %v186_v15 = vld [vmem:[%s1780_s29 + $0x78] sm:$0xff] }
  0x75   : > { %800 = vmatpush.msrb.mxu2 %v425_v16  ;;  %819 = vmatpush.msrb.mxu3 %v442_v17 }
  0x76   : > { %761 = vmatpush.msrb.mxu0 %v392_v18  ;;  %780 = vmatpush.msrb.mxu1 %v409_v19 }
  0x77   : > { %801 = vmatpush.msrb.mxu2 %v424_v20  ;;  %820 = vmatpush.msrb.mxu3 %v441_v21 }
  0x78   : > { %762 = vmatpush.msrb.mxu0 %v391_v22  ;;  %781 = vmatpush.msrb.mxu1 %v408_v23  ;;  %v446_v23 = vld [vmem:[%s2496_s1 + $0x818] sm:$0xff] }
  0x79   : > { %802 = vmatpush.msrb.mxu2 %v423_v24  ;;  %821 = vmatpush.msrb.mxu3 %v440_v25  ;;  %v445_v24 = vld [vmem:[%s2496_s1 + $0x810] sm:$0xff] }
  0x7a   : > { %763 = vmatpush.msrb.mxu0 %v390_v26  ;;  %782 = vmatpush.msrb.mxu1 %v407_v27  ;;  %v444_v27 = vld [vmem:[%s2496_s1 + $0x808] sm:$0xff] }
  0x7b   : > { %803 = vmatpush.msrb.mxu2 %v422_v28  ;;  %822 = vmatpush.msrb.mxu3 %v439_v29  ;;  %v443_v29 = vld [vmem:[%s2496_s1 + $0x800] sm:$0xff] }
  0x7c   : > { %764 = vmatpush.msrb.mxu0 %v389_v30  ;;  %783 = vmatpush.msrb.mxu1 %v406_v31 }
  0x7d   : > { %804 = vmatpush.msrb.mxu2 %v421_v32  ;;  %823 = vmatpush.msrb.mxu3 %v438_v33 }
  0x7e   : > { %765 = vmatpush.msrb.mxu0 %v388_v34  ;;  %784 = vmatpush.msrb.mxu1 %v405_v35 }
  0x7f   : > { %805 = vmatpush.msrb.mxu2 %v420_v36  ;;  %824 = vmatpush.msrb.mxu3 %v437_v37 }
  0x80   : > { %766 = vmatpush.msrb.mxu0 %v387_v38  ;;  %785 = vmatpush.msrb.mxu1 %v404_v39 }
  0x81   : > { %806 = vmatpush.msrb.mxu2 %v419_v40  ;;  %825 = vmatpush.msrb.mxu3 %v436_v41 }
  0x82   : > { %767 = vmatpush.msrb.mxu0 %v386_v42  ;;  %786 = vmatpush.msrb.mxu1 %v403_v43 }
  0x83   : > { %807 = vmatpush.msrb.mxu2 %v418_v44  ;;  %826 = vmatpush.msrb.mxu3 %v435_v45 }
  0x84   : > { %768 = vmatpush.msrb.mxu0 %v385_v46  ;;  %787 = vmatpush.msrb.mxu1 %v402_v47 }
  0x85   : > { %808 = vmatpush.msrb.mxu2 %v417_v48  ;;  %827 = vmatpush.msrb.mxu3 %v434_v49 }
  0x86   : > { %769 = vmatpush.msrb.mxu0 %v384_v50  ;;  %788 = vmatpush.msrb.mxu1 %v401_v51 }
  0x87   : > { %809 = vmatpush.msrb.mxu2 %v416_v52  ;;  %828 = vmatpush.msrb.mxu3 %v433_v53 }
  0x88   : > { %770 = vmatpush.msrb.mxu0 %v383_v54  ;;  %789 = vmatpush.msrb.mxu1 %v400_v55  ;;  %v495_v54 = vld [vmem:[%s2497_s2 + $0x180] sm:$0xff]  ;;  %v496_v55 = vld [vmem:[%s2497_s2 + $0x188] sm:$0xff] }
  0x89   : > { %810 = vmatpush.msrb.mxu2 %v415_v56  ;;  %829 = vmatpush.msrb.mxu3 %v432_v57  ;;  %v497_v56 = vld [vmem:[%s2497_s2 + $0x190] sm:$0xff]  ;;  %v498_v57 = vld [vmem:[%s2497_s2 + $0x198] sm:$0xff] }
  0x8a   : > { %771 = vmatpush.msrb.mxu0 %v382_v58  ;;  %790 = vmatpush.msrb.mxu1 %v399_v59  ;;  %v479_v58 = vld [vmem:[%s2497_s2 + $0x100] sm:$0xff]  ;;  %v480_v59 = vld [vmem:[%s2497_s2 + $0x108] sm:$0xff] }
  0x8b   : > { %811 = vmatpush.msrb.mxu2 %v414_v60  ;;  %830 = vmatpush.msrb.mxu3 %v431_v61  ;;  %v481_v60 = vld [vmem:[%s2497_s2 + $0x110] sm:$0xff]  ;;  %v482_v61 = vld [vmem:[%s2497_s2 + $0x118] sm:$0xff] }
  0x8c   : > { %772 = vmatpush.msrb.mxu0 %v381_v62  ;;  %791 = vmatpush.msrb.mxu1 %v398_v63  ;;  %v463_v62 = vld [vmem:[%s2497_s2 + $0x80] sm:$0xff]  ;;  %v464_v63 = vld [vmem:[%s2497_s2 + $0x88] sm:$0xff] }
  0x8d   : > { %812 = vmatpush.msrb.mxu2 %v413_v0  ;;  %831 = vmatpush.msrb.mxu3 %v430_v1  ;;  %v465_v0 = vld [vmem:[%s2497_s2 + $0x90] sm:$0xff]  ;;  %v466_v1 = vld [vmem:[%s2497_s2 + $0x98] sm:$0xff] }
  0x8e   : > { %773 = vmatpush.msrb.mxu0 %v380_v2  ;;  %792 = vmatpush.msrb.mxu1 %v397_v3  ;;  %v447_v2 = vld [vmem:[%s2497_s2] sm:$0xff]  ;;  %v448_v3 = vld [vmem:[%s2497_s2 + $0x8] sm:$0xff] }
  0x8f   : > { %813 = vmatpush.msrb.mxu2 %v412_v4  ;;  %832 = vmatpush.msrb.mxu3 %v429_v5  ;;  %v449_v4 = vld [vmem:[%s2497_s2 + $0x10] sm:$0xff]  ;;  %v450_v5 = vld [vmem:[%s2497_s2 + $0x18] sm:$0xff] }
  0x90   : > { %774 = vmatpush.msrb.mxu0 %v379_v6  ;;  %793 = vmatpush.msrb.mxu1 %v396_v7  ;;  %v499_v6 = vld [vmem:[%s2497_s2 + $0x1a0] sm:$0xff]  ;;  %v500_v7 = vld [vmem:[%s2497_s2 + $0x1a8] sm:$0xff] }
  0x91   : > { %814 = vmatpush.msrb.mxu2 %v411_v8  ;;  %833 = vmatpush.msrb.mxu3 %v428_v9  ;;  %v501_v8 = vld [vmem:[%s2497_s2 + $0x1b0] sm:$0xff]  ;;  %v502_v9 = vld [vmem:[%s2497_s2 + $0x1b8] sm:$0xff] }
  0x92   : > { %775 = vmatmul.f32.vlgmr.msrb.gmra.mxu0 %v183_v10  ;;  %815 = vmatmul.f32.vlgmr.msrb.gmra.mxu2 %v185_v11  ;;  %v483_v10 = vld [vmem:[%s2497_s2 + $0x120] sm:$0xff]  ;;  %v484_v11 = vld [vmem:[%s2497_s2 + $0x128] sm:$0xff] }
  0x93   : > { %794 = vmatpush.msrb.mxu1 %v395_v12  ;;  %834 = vmatpush.msrb.mxu3 %v427_v13  ;;  %v485_v12 = vld [vmem:[%s2497_s2 + $0x130] sm:$0xff]  ;;  %v486_v13 = vld [vmem:[%s2497_s2 + $0x138] sm:$0xff] }
  0x94   : > { %795 = vmatmul.f32.vlgmr.msrb.gmra.mxu1 %v184_v14  ;;  %835 = vmatmul.f32.vlgmr.msrb.gmra.mxu3 %v186_v15  ;;  %v467_v14 = vld [vmem:[%s2497_s2 + $0xa0] sm:$0xff]  ;;  %v468_v15 = vld [vmem:[%s2497_s2 + $0xa8] sm:$0xff] }
  0x95   : > { %855 = vmatpush.msra.mxu0 %v446_v23  ;;  %880 = vmatpush.msra.mxu1 %v446_v23 }
  0x96   : > { %948 = vmatpush.msra.mxu2 %v495_v54  ;;  %968 = vmatpush.msra.mxu3 %v496_v55  ;;  %v493_v54 = vld [vmem:[%s2497_s2 + $0x170] sm:$0xff]  ;;  %v494_v55 = vld [vmem:[%s2497_s2 + $0x178] sm:$0xff] }
  0x97   : > { %856 = vmatpush.msra.mxu0 %v445_v24  ;;  %881 = vmatpush.msra.mxu1 %v445_v24 }
  0x98   : > { %949 = vmatpush.msra.mxu2 %v479_v58  ;;  %969 = vmatpush.msra.mxu3 %v480_v59  ;;  %v477_v58 = vld [vmem:[%s2497_s2 + $0xf0] sm:$0xff]  ;;  %v478_v59 = vld [vmem:[%s2497_s2 + $0xf8] sm:$0xff] }
  0x99   : > { %857 = vmatpush.msra.mxu0 %v444_v27  ;;  %882 = vmatpush.msra.mxu1 %v444_v27 }
  0x9a   : > { %950 = vmatpush.msra.mxu2 %v463_v62  ;;  %970 = vmatpush.msra.mxu3 %v464_v63  ;;  %v461_v62 = vld [vmem:[%s2497_s2 + $0x70] sm:$0xff]  ;;  %v462_v63 = vld [vmem:[%s2497_s2 + $0x78] sm:$0xff] }
  0x9b   : > { %858 = vmatpush.msra.mxu0 %v443_v29  ;;  %883 = vmatpush.msra.mxu1 %v443_v29 }
  0x9c   : > { %951 = vmatpush.msra.mxu2 %v447_v2  ;;  %971 = vmatpush.msra.mxu3 %v448_v3 }
  0x9d   : > { %988 = vmatpush.msrb.mxu0 %v497_v56  ;;  %1008 = vmatpush.msrb.mxu1 %v498_v57  ;;  %v475_v56 = vld [vmem:[%s2497_s2 + $0xe0] sm:$0xff]  ;;  %v476_v57 = vld [vmem:[%s2497_s2 + $0xe8] sm:$0xff] }
  0x9e   : > { %1028 = vmatpush.msrb.mxu2 %v499_v6  ;;  %1048 = vmatpush.msrb.mxu3 %v500_v7 }
  0x9f   : > { %989 = vmatpush.msrb.mxu0 %v481_v60  ;;  %1009 = vmatpush.msrb.mxu1 %v482_v61  ;;  %v459_v60 = vld [vmem:[%s2497_s2 + $0x60] sm:$0xff]  ;;  %v460_v61 = vld [vmem:[%s2497_s2 + $0x68] sm:$0xff] }
  0xa0   : > { %1029 = vmatpush.msrb.mxu2 %v483_v10  ;;  %1049 = vmatpush.msrb.mxu3 %v484_v11 }
  0xa1   : > { %990 = vmatpush.msrb.mxu0 %v465_v0  ;;  %1010 = vmatpush.msrb.mxu1 %v466_v1  ;;  %v1336_v0 = vld [vmem:[%s2497_s2 + $0x200] ss:$8 sm:$0xf] }
  0xa2   : > { %1030 = vmatpush.msrb.mxu2 %v467_v14  ;;  %1050 = vmatpush.msrb.mxu3 %v468_v15  ;;  %v1337_v1 = vld [vmem:[%s2497_s2 + $0x200] ss:$8 sm:$0xf0] }
  0xa3   : > { %991 = vmatpush.msrb.mxu0 %v449_v4  ;;  %1011 = vmatpush.msrb.mxu1 %v450_v5  ;;  %v514_v2 = vor.u32 %v1337_v1, %v1336_v0 }
  0xa5   : > { %v903_v3 = vperm.slane %v514_v2, 2  ;;  %v904_v4 = vperm.slane %v514_v2, 3  ;;  %v902_v10 = vperm.slane %v514_v2, 1  ;;  %v908_v14 = vperm.slane %v514_v2, 7 }
  0xc9   : > { %v536_v17 = vpop.f32.mrf.mxu0 }
  0xcc   : > { %v556_v16 = vpop.f32.mrf.mxu1 }
  0xcd   : > { %v557_v18 = vadd.f32 %v556_v16, %v536_v17  ;;  %v576_v19 = vpop.f32.mrf.mxu2  ;;  %v469_v16 = vld [vmem:[%s2497_s2 + $0xb0] sm:$0xff]  ;;  %v470_v17 = vld [vmem:[%s2497_s2 + $0xb8] sm:$0xff] }
  0xcf   : > { %v577_v20 = vadd.f32 %v576_v19, %v557_v18  ;;  %v451_v18 = vld [vmem:[%s2497_s2 + $0x20] sm:$0xff]  ;;  %v452_v19 = vld [vmem:[%s2497_s2 + $0x28] sm:$0xff] }
  0xd0   : > { %v596_v21 = vpop.f32.mrf.mxu3  ;;  %1031 = vmatpush.msrb.mxu2 %v451_v18  ;;  %1051 = vmatpush.msrb.mxu3 %v452_v19  ;;  %v1339_v18 = vld [vmem:[%s2497_s2 + $0x240] ss:$8 sm:$0xf0] }
  0xd1   : > { %v597_v22 = vadd.f32 %v596_v21, %v577_v20  ;;  %v453_v20 = vld [vmem:[%s2497_s2 + $0x30] sm:$0xff]  ;;  %v454_v21 = vld [vmem:[%s2497_s2 + $0x38] sm:$0xff] }
  0xd3   : > { %v616_v25 = vpop.f32.mrf.mxu0 }
  0xd4   : > { %v617_v26 = vadd.f32 %v616_v25, %v597_v22 }
  0xd6   : > { %v636_v28 = vpop.f32.mrf.mxu1 }
  0xd7   : > { %v637_v30 = vadd.f32 %v636_v28, %v617_v26  ;;  %v656_v31 = vpop.f32.mrf.mxu2 }
  0xd9   : > { %v657_v32 = vadd.f32 %v656_v31, %v637_v30 }
  0xda   : > { %v676_v33 = vpop.f32.mrf.mxu3 }
  0xdb   : > { %v677_v35 = vadd.f32 %v676_v33, %v657_v32  ;;  %v503_v32 = vld [vmem:[%s2497_s2 + $0x1c0] sm:$0xff]  ;;  %v504_v33 = vld [vmem:[%s2497_s2 + $0x1c8] sm:$0xff] }
  0xed   : > { %v696_v34 = vpop.f32.mrf.mxu0 }
  0xee   : > { %v697_v36 = vadd.f32 %v696_v34, %v677_v35  ;;  %v505_v34 = vld [vmem:[%s2497_s2 + $0x1d0] sm:$0xff]  ;;  %v506_v35 = vld [vmem:[%s2497_s2 + $0x1d8] sm:$0xff] }
  0xf0   : > { %v716_v37 = vpop.f32.mrf.mxu1 }
  0xf1   : > { %v717_v39 = vadd.f32 %v716_v37, %v697_v36  ;;  %v487_v36 = vld [vmem:[%s2497_s2 + $0x140] sm:$0xff]  ;;  %v488_v37 = vld [vmem:[%s2497_s2 + $0x148] sm:$0xff] }
  0xf3   : > { %v736_v38 = vpop.f32.mrf.mxu2 }
  0xf4   : > { %v737_v40 = vadd.f32 %v736_v38, %v717_v39  ;;  %v489_v38 = vld [vmem:[%s2497_s2 + $0x150] sm:$0xff]  ;;  %v490_v39 = vld [vmem:[%s2497_s2 + $0x158] sm:$0xff] }
  0xf6   : > { %v756_v41 = vpop.f32.mrf.mxu3 }
  0xf7   : > { %v757_v42 = vadd.f32 %v756_v41, %v737_v40  ;;  %v471_v40 = vld [vmem:[%s2497_s2 + $0xc0] sm:$0xff]  ;;  %v472_v41 = vld [vmem:[%s2497_s2 + $0xc8] sm:$0xff] }
 0x10f   : > { %v776_v43 = vpop.f32.mrf.mxu0 }
 0x110   : > { %v777_v44 = vadd.f32 %v776_v43, %v757_v42  ;;  %v473_v42 = vld [vmem:[%s2497_s2 + $0xd0] sm:$0xff]  ;;  %v474_v43 = vld [vmem:[%s2497_s2 + $0xd8] sm:$0xff] }
 0x111   : > { %v796_v45 = vpop.f32.mrf.mxu1 }
 0x112   : > { %v797_v46 = vadd.f32 %v796_v45, %v777_v44  ;;  %v455_v44 = vld [vmem:[%s2497_s2 + $0x40] sm:$0xff]  ;;  %v456_v45 = vld [vmem:[%s2497_s2 + $0x48] sm:$0xff] }
 0x115   : > { %v816_v47 = vpop.f32.mrf.mxu2 }
 0x116   : > { %v817_v48 = vadd.f32 %v816_v47, %v797_v46  ;;  %v457_v46 = vld [vmem:[%s2497_s2 + $0x50] sm:$0xff]  ;;  %v458_v47 = vld [vmem:[%s2497_s2 + $0x58] sm:$0xff] }
 0x117   : > { %v836_v49 = vpop.f32.mrf.mxu3 }
 0x118   : > { %v837_v50 = vadd.f32 %v836_v49, %v817_v48  ;;  %v507_v48 = vld [vmem:[%s2497_s2 + $0x1e0] sm:$0xff]  ;;  %v508_v49 = vld [vmem:[%s2497_s2 + $0x1e8] sm:$0xff] }
 0x11a   : > { %1340 = vmatmul.msk.f32.vlgmr.msra.gmra.mxu0 %vm839_vm0, %v837_v50 }
 0x11b   : > { %1068 = vmatpush.msra.mxu0 %v501_v8 }
 0x11d   : > { %1069 = vmatpush.msra.mxu0 %v485_v12 }
 0x11f   : > { %1070 = vmatpush.msra.mxu0 %v469_v16 }
 0x121   : > { %1071 = vmatpush.msra.mxu0 %v453_v20 }
 0x197   : > { %v860_v51 = vpop.f32.mrf.mxu0 }
 0x198   : > { %v2225_v52 = vsub.f32 %v837_v50, %v860_v51  ;;  %v509_v50 = vld [vmem:[%s2497_s2 + $0x1f0] sm:$0xff]  ;;  %v510_v51 = vld [vmem:[%s2497_s2 + $0x1f8] sm:$0xff] }
 0x19a   : > { %v864_v53 = vmul.f32 %v2225_v52, %v2225_v52 }
 0x19c   : > { %1341 = vmatmul.msk.f32.vlgmr.msra.gmra.mxu1 %vm839_vm0, %v864_v53  ;;  %v492_v53 = vld [vmem:[%s2497_s2 + $0x168] sm:$0xff] }
 0x19d   : > { %1088 = vmatpush.msra.mxu1 %v502_v9  ;;  %v901_v9 = vperm.slane %v514_v2, 0 }
 0x19f   : > { %1089 = vmatpush.msra.mxu1 %v486_v13  ;;  %v907_v13 = vperm.slane %v514_v2, 6 }
 0x1a1   : > { %1090 = vmatpush.msra.mxu1 %v470_v17  ;;  %v1338_v17 = vld [vmem:[%s2497_s2 + $0x240] ss:$8 sm:$0xf] }
 0x1a3   : > { %1091 = vmatpush.msra.mxu1 %v454_v21 }
 0x219   : > { %v885_v22 = vpop.f32.mrf.mxu1 }
 0x21a   : > { %v886_v23 = vadd.f32 1e-05, %v885_v22 }
 0x21c   : > { %1370 = vrsqrt.f32 %v886_v23  ;;  %vm894_vm2 = vweird.f32 %v886_v23 }
 0x222   : > { %v1371_v24 = vpop.eup %1370 }
 0x223   : > { %v889_v25 = vmul.f32 %v1371_v24, %v886_v23  ;;  %vm895_vm1 = vweird.f32 %v1371_v24  ;;  %v518_v23 = vor.u32 %v1339_v18, %v1338_v17 }
 0x224   : > { %vm896_vm3 = vmor %vm894_vm2, %vm895_vm1 }
 0x225   : > { %v890_v26 = vmul.f32 %v1371_v24, %v889_v25  ;;  %v906_v25 = vperm.slane %v514_v2, 5 }
 0x227   : > { %v891_v27 = vmul.f32 0.5, %v890_v26 }
 0x229   : > { %v892_v28 = vsub.f32 1.5, %v891_v27 }
 0x22b   : > { %v893_v29 = vmul.f32 %v1371_v24, %v892_v28  ;;  %v911_v28 = vperm.slane %v518_v23, 2 }
 0x22d   : > { %v897_v30 = vsel %vm896_vm3, %v1371_v24, %v893_v29  ;;  %v905_v24 = vperm.slane %v514_v2, 4  ;;  %v912_v29 = vperm.slane %v518_v23, 3 }
 0x22e   : > { %v2327_v31 = vmul.f32 %v897_v30, %v2225_v52  ;;  %v491_v52 = vld [vmem:[%s2497_s2 + $0x160] sm:$0xff] }
 0x230   : > { %1342 = vmatmul.msk.f32.vlgmr.msra.gmra.mxu2 %vm839_vm0, %v2327_v31  ;;  %1343 = vmatmul.msk.f32.vlgmr.msra.gmra.mxu3 %vm839_vm0, %v2327_v31 }
 0x231   : > { %1344 = vmatmul.msk.f32.vlgmr.msrb.gmra.mxu0 %vm839_vm0, %v2327_v31  ;;  %1345 = vmatmul.msk.f32.vlgmr.msrb.gmra.mxu1 %vm839_vm0, %v2327_v31 }
 0x232   : > { %1108 = vmatpush.msra.mxu2 %v503_v32  ;;  %1128 = vmatpush.msra.mxu3 %v504_v33 }
 0x233   : > { %1148 = vmatpush.msrb.mxu0 %v505_v34  ;;  %1168 = vmatpush.msrb.mxu1 %v506_v35 }
 0x234   : > { %1109 = vmatpush.msra.mxu2 %v487_v36  ;;  %1129 = vmatpush.msra.mxu3 %v488_v37  ;;  %v909_v36 = vperm.slane %v518_v23, 0  ;;  %v910_v37 = vperm.slane %v518_v23, 1 }
 0x235   : > { %1149 = vmatpush.msrb.mxu0 %v489_v38  ;;  %1169 = vmatpush.msrb.mxu1 %v490_v39 }
 0x236   : > { %1110 = vmatpush.msra.mxu2 %v471_v40  ;;  %1130 = vmatpush.msra.mxu3 %v472_v41  ;;  %v915_v40 = vperm.slane %v518_v23, 6  ;;  %v916_v41 = vperm.slane %v518_v23, 7 }
 0x237   : > { %1150 = vmatpush.msrb.mxu0 %v473_v42  ;;  %1170 = vmatpush.msrb.mxu1 %v474_v43 }
 0x238   : > { %1346 = vmatmul.msk.f32.vlgmr.msrb.gmra.mxu2 %vm839_vm0, %v2327_v31  ;;  %1347 = vmatmul.msk.f32.vlgmr.msrb.gmra.mxu3 %vm839_vm0, %v2327_v31 }
 0x239   : > { %1348 = vmatmul.msk.f32.vlgmr.msra.gmra.mxu0 %vm839_vm0, %v2327_v31  ;;  %1349 = vmatmul.msk.f32.vlgmr.msra.gmra.mxu1 %vm839_vm0, %v2327_v31 }
 0x23a   : > { %1111 = vmatpush.msra.mxu2 %v455_v44  ;;  %1131 = vmatpush.msra.mxu3 %v456_v45 }
 0x23b   : > { %1151 = vmatpush.msrb.mxu0 %v457_v46  ;;  %1171 = vmatpush.msrb.mxu1 %v458_v47 }
 0x23c   : > { %1188 = vmatpush.msrb.mxu2 %v507_v48  ;;  %1208 = vmatpush.msrb.mxu3 %v508_v49  ;;  %v913_v48 = vperm.slane %v518_v23, 4  ;;  %v914_v49 = vperm.slane %v518_v23, 5 }
 0x23d   : > { %1228 = vmatpush.msra.mxu0 %v509_v50  ;;  %1248 = vmatpush.msra.mxu1 %v510_v51 }
 0x23e   : > { %1189 = vmatpush.msrb.mxu2 %v491_v52  ;;  %1209 = vmatpush.msrb.mxu3 %v492_v53 }
 0x23f   : > { %1229 = vmatpush.msra.mxu0 %v493_v54  ;;  %1249 = vmatpush.msra.mxu1 %v494_v55 }
 0x240   : > { %1350 = vmatmul.msk.f32.vlgmr.msra.gmra.mxu2 %vm839_vm0, %v2327_v31  ;;  %1351 = vmatmul.msk.f32.vlgmr.msra.gmra.mxu3 %vm839_vm0, %v2327_v31 }
 0x241   : > { %1352 = vmatmul.msk.f32.vlgmr.msrb.gmra.mxu0 %vm839_vm0, %v2327_v31  ;;  %1353 = vmatmul.msk.f32.vlgmr.msrb.gmra.mxu1 %vm839_vm0, %v2327_v31 }
 0x242   : > { %1190 = vmatpush.msrb.mxu2 %v475_v56  ;;  %1210 = vmatpush.msrb.mxu3 %v476_v57 }
 0x243   : > { %1230 = vmatpush.msra.mxu0 %v477_v58  ;;  %1250 = vmatpush.msra.mxu1 %v478_v59 }
 0x244   : > { %1191 = vmatpush.msrb.mxu2 %v459_v60  ;;  %1211 = vmatpush.msrb.mxu3 %v460_v61 }
 0x245   : > { %1231 = vmatpush.msra.mxu0 %v461_v62  ;;  %1251 = vmatpush.msra.mxu1 %v462_v63 }
 0x248   : > { %1354 = vmatmul.msk.f32.vlgmr.msrb.gmra.mxu2 %vm839_vm0, %v2327_v31  ;;  %1355 = vmatmul.msk.f32.vlgmr.msrb.gmra.mxu3 %vm839_vm0, %v2327_v31 }
 0x249   : > { %1356 = vmatmul.msk.f32.vlgmr.msra.gmra.mxu0 %vm839_vm0, %v2327_v31  ;;  %1357 = vmatmul.msk.f32.vlgmr.msra.gmra.mxu1 %vm839_vm0, %v2327_v31 }
 0x2ae   : > { %v993_v5 = vpop.f32.mrf.mxu0  ;;  %v1013_v6 = vpop.f32.mrf.mxu1 }
 0x2af   : > { %v994_v7 = vadd.f32 %v993_v5, %v903_v3  ;;  %v1014_v8 = vadd.f32 %v1013_v6, %v904_v4 }
 0x2b1   : > { %1258 = vst [vmem:[%s2468_s27 + $0x10] sm:$0xff] %v994_v7 }
 0x2b2   : > { %1259 = vst [vmem:[%s2468_s27 + $0x18] sm:$0xff] %v1014_v8 }
 0x2b3   : > { %v953_v11 = vpop.f32.mrf.mxu2  ;;  %v973_v12 = vpop.f32.mrf.mxu3 }
 0x2b4   : > { %v954_v15 = vadd.f32 %v953_v11, %v901_v9  ;;  %v974_v16 = vadd.f32 %v973_v12, %v902_v10 }
 0x2b6   : > { %1256 = vst [vmem:[%s2468_s27] sm:$0xff] %v954_v15  ;;  %v1073_v19 = vpop.f32.mrf.mxu0  ;;  %v1093_v20 = vpop.f32.mrf.mxu1 }
 0x2b7   : > { %1257 = vst [vmem:[%s2468_s27 + $0x8] sm:$0xff] %v974_v16  ;;  %v1074_v21 = vadd.f32 %v1073_v19, %v907_v13  ;;  %v1094_v22 = vadd.f32 %v1093_v20, %v908_v14 }
 0x2b9   : > { %1262 = vst [vmem:[%s2468_s27 + $0x30] sm:$0xff] %v1074_v21 }
 0x2ba   : > { %1263 = vst [vmem:[%s2468_s27 + $0x38] sm:$0xff] %v1094_v22 }
 0x2bb   : > { %v1033_v26 = vpop.f32.mrf.mxu2  ;;  %v1053_v27 = vpop.f32.mrf.mxu3 }
 0x2bc   : > { %v1034_v30 = vadd.f32 %v1033_v26, %v905_v24  ;;  %v1054_v31 = vadd.f32 %v1053_v27, %v906_v25 }
 0x2be   : > { %1260 = vst [vmem:[%s2468_s27 + $0x20] sm:$0xff] %v1034_v30  ;;  %v1153_v32 = vpop.f32.mrf.mxu0  ;;  %v1173_v33 = vpop.f32.mrf.mxu1 }
 0x2bf   : > { %1261 = vst [vmem:[%s2468_s27 + $0x28] sm:$0xff] %v1054_v31  ;;  %v1154_v34 = vadd.f32 %v1153_v32, %v911_v28  ;;  %v1174_v35 = vadd.f32 %v1173_v33, %v912_v29 }
 0x2c1   : > { %1266 = vst [vmem:[%s2468_s27 + $0x50] sm:$0xff] %v1154_v34 }
 0x2c2   : > { %1267 = vst [vmem:[%s2468_s27 + $0x58] sm:$0xff] %v1174_v35 }
 0x2c3   : > { %v1113_v38 = vpop.f32.mrf.mxu2  ;;  %v1133_v39 = vpop.f32.mrf.mxu3 }
 0x2c4   : > { %v1114_v42 = vadd.f32 %v1113_v38, %v909_v36  ;;  %v1134_v43 = vadd.f32 %v1133_v39, %v910_v37 }
 0x2c6   : > { %1264 = vst [vmem:[%s2468_s27 + $0x40] sm:$0xff] %v1114_v42  ;;  %v1233_v44 = vpop.f32.mrf.mxu0  ;;  %v1253_v45 = vpop.f32.mrf.mxu1 }
 0x2c7   : > { %1265 = vst [vmem:[%s2468_s27 + $0x48] sm:$0xff] %v1134_v43  ;;  %v1234_v46 = vadd.f32 %v1233_v44, %v915_v40  ;;  %v1254_v47 = vadd.f32 %v1253_v45, %v916_v41 }
 0x2c9   : > { %1270 = vst [vmem:[%s2468_s27 + $0x70] sm:$0xff] %v1234_v46 }
 0x2ca   : > { %1271 = vst [vmem:[%s2468_s27 + $0x78] sm:$0xff] %v1254_v47 }
 0x2cb   : > { %v1193_v50 = vpop.f32.mrf.mxu2  ;;  %v1213_v51 = vpop.f32.mrf.mxu3 }
 0x2cc   : > { %v1194_v52 = vadd.f32 %v1193_v50, %v913_v48  ;;  %v1214_v53 = vadd.f32 %v1213_v51, %v914_v49 }
 0x2ce   : > { %1268 = vst [vmem:[%s2468_s27 + $0x60] sm:$0xff] %v1194_v52 }
 0x2cf   : > { %1269 = vst [vmem:[%s2468_s27 + $0x68] sm:$0xff] %v1214_v53 }
 0x2d0 PF: > { %s13_s12 = sadd.s32 1, %s1378_s12  }
 0x2d1   : > { %p10_p4 = scmp.ge.s32.totalorder %s13_s12, 4  }
 0x2d3   :  { %12 = sbr.rel (!%p10_p4) target bundleno = 1 (0x1), region = 64 }

</bundles_post_ra>
